<compile_context>
chip_gen: v7x
topology: tpu7x:2x2x1
jax: 0.10.0
libtpu: 0.0.40
codegen_flags: <defaults>
</compile_context>

<pallas_src>
import math

import jax
import jax.numpy as jnp
from jax.experimental import pallas as pl
from jax.experimental.pallas import tpu as pltpu

DROPOUT_P = 0.5
LANE = 128
SUBLANE = 8


def _round_up(n, m):
    return ((n + m - 1) // m) * m


def fcblock_kernel(x_ref, m1_ref, m2_ref,
                   w1_ref, b1_ref,
                   w2_ref, b2_ref,
                   w3_ref, b3_ref,
                   o_ref):
    # Elementwise in f32; bf16 only at the MXU inputs; f32 accumulation.
    h = x_ref[...] * m1_ref[...]                       # dropout #1 (scale folded into w1)
    h = jnp.dot(h.astype(jnp.bfloat16), w1_ref[...],
                preferred_element_type=jnp.float32) + b1_ref[...]
    h = jnp.maximum(h, 0.0)                            # relu

    h = h * m2_ref[...]                                # dropout #2 (scale folded into w2)
    h = jnp.dot(h.astype(jnp.bfloat16), w2_ref[...],
                preferred_element_type=jnp.float32) + b2_ref[...]
    h = jnp.maximum(h, 0.0)                            # relu

    out = jnp.dot(h.astype(jnp.bfloat16), w3_ref[...],
                  preferred_element_type=jnp.float32) + b3_ref[...]
    o_ref[...] = out                                   # lane-dense (padded) store


def fcblock_vgg_forward(x, params, seed, *, batch_tile=128):
    """x: (B, input_dim) f32. params: weights pre-transposed to (in, out),
    biases (1, out). Dropout is always active (training semantics)."""
    B, d_in = x.shape
    h1 = params["w1"].shape[1]
    h2 = params["w2"].shape[1]
    d_out = params["w3"].shape[1]

    # Lane-dense padding of every feature dim, sublane-aligned batch tiling.
    d_in_p = _round_up(d_in, LANE)
    h1_p = _round_up(h1, LANE)
    h2_p = _round_up(h2, LANE)
    d_out_p = _round_up(d_out, LANE)
    tb = min(_round_up(B, SUBLANE), batch_tile)
    B_p = _round_up(B, tb)

    def pad2(a, rows, cols):
        return jnp.pad(a, ((0, rows - a.shape[0]), (0, cols - a.shape[1])))

    xp = pad2(x.astype(jnp.float32), B_p, d_in_p)

    # Fold dropout scale 1/(1-p) into w1 / w2 (numerically identical).
    scale = 1.0 / (1.0 - DROPOUT_P)
    w1 = pad2(params["w1"] * scale, d_in_p, h1_p).astype(jnp.bfloat16)
    w2 = pad2(params["w2"] * scale, h1_p, h2_p).astype(jnp.bfloat16)
    w3 = pad2(params["w3"], h2_p, d_out_p).astype(jnp.bfloat16)
    b1 = pad2(params["b1"].astype(jnp.float32), 1, h1_p)
    b2 = pad2(params["b2"].astype(jnp.float32), 1, h2_p)
    b3 = pad2(params["b3"].astype(jnp.float32), 1, d_out_p)

    # Dropout keep masks (p=0.5), host-side JAX PRNG -> deterministic per seed,
    # runs on TPU and under interpret mode.
    key = jax.random.PRNGKey(seed)
    k1, k2 = jax.random.split(key)
    m1 = jax.random.bernoulli(k1, 1.0 - DROPOUT_P, (B_p, d_in_p)).astype(jnp.float32)
    m2 = jax.random.bernoulli(k2, 1.0 - DROPOUT_P, (B_p, h1_p)).astype(jnp.float32)

    # VMEM budget: double-buffered blocks + headroom, clamped for v7x (64 MiB).
    def nbytes(shape, dtype):
        return math.prod(shape) * jnp.dtype(dtype).itemsize

    block_bytes = (
        2 * nbytes((tb, d_in_p), jnp.float32)            # x, m1
        + nbytes((tb, h1_p), jnp.float32)                # m2
        + nbytes((d_in_p, h1_p), jnp.bfloat16)
        + nbytes((h1_p, h2_p), jnp.bfloat16)
        + nbytes((h2_p, d_out_p), jnp.bfloat16)
        + nbytes((1, h1_p), jnp.float32)
        + nbytes((1, h2_p), jnp.float32)
        + nbytes((1, d_out_p), jnp.float32)
        + nbytes((tb, d_out_p), jnp.float32)
    )
    vmem_limit = min(2 * block_bytes + (8 << 20), 64 << 20)

    on_tpu = jax.devices()[0].platform == "tpu"
    compiler_params = (
        pltpu.CompilerParams(
            dimension_semantics=("parallel",),   # batch tiles shard across TCs
            vmem_limit_bytes=int(vmem_limit),
        )
        if on_tpu else None
    )

    out_p = pl.pallas_call(
        fcblock_kernel,
        out_shape=jax.ShapeDtypeStruct((B_p, d_out_p), jnp.float32),
        grid=(B_p // tb,),
        in_specs=[
            pl.BlockSpec((tb, d_in_p), lambda i: (i, 0)),     # x
            pl.BlockSpec((tb, d_in_p), lambda i: (i, 0)),     # mask1
            pl.BlockSpec((tb, h1_p), lambda i: (i, 0)),       # mask2
            pl.BlockSpec((d_in_p, h1_p), lambda i: (0, 0)),   # w1
            pl.BlockSpec((1, h1_p), lambda i: (0, 0)),        # b1
            pl.BlockSpec((h1_p, h2_p), lambda i: (0, 0)),     # w2
            pl.BlockSpec((1, h2_p), lambda i: (0, 0)),        # b2
            pl.BlockSpec((h2_p, d_out_p), lambda i: (0, 0)),  # w3
            pl.BlockSpec((1, d_out_p), lambda i: (0, 0)),     # b3
        ],
        out_specs=pl.BlockSpec((tb, d_out_p), lambda i: (i, 0)),
        compiler_params=compiler_params,
    )(xp, m1, m2, w1, b1, w2, b2, w3, b3)

    # Strip batch / feature padding.
    return out_p[:B, :d_out]


def init_params(key, input_dim, hidden_dims, output_dim=10):
    """Mimics nn.Linear default init (uniform +-1/sqrt(fan_in)).
    Weights stored pre-transposed as (in, out); biases as (1, out)."""
    dims = [(input_dim, hidden_dims[0]),
            (hidden_dims[0], hidden_dims[1]),
            (hidden_dims[1], output_dim)]
    params = {}
    for i, (fan_in, fan_out) in enumerate(dims, start=1):
        key, kw, kb = jax.random.split(key, 3)
        bound = 1.0 / math.sqrt(fan_in)
        params[f"w{i}"] = jax.random.uniform(
            kw, (fan_in, fan_out), jnp.float32, -bound, bound)
        params[f"b{i}"] = jax.random.uniform(
            kb, (1, fan_out), jnp.float32, -bound, bound)
    return params


if __name__ == "__main__":
    key = jax.random.PRNGKey(0)
    key, kx, kp = jax.random.split(key, 3)

    B, input_dim = 8, 32
    hidden_dims = (64, 32)
    output_dim = 10

    x = jax.random.normal(kx, (B, input_dim), dtype=jnp.float32)
    params = init_params(kp, input_dim, hidden_dims, output_dim)

    out = fcblock_vgg_forward(x, params, seed=1234)
    out = jax.block_until_ready(out)
    assert out.shape == (B, output_dim), out.shape
    assert bool(jnp.all(jnp.isfinite(out)))
    print("KERNEL_OK")
</pallas_src>

<mosaic_0001>
module attributes {stable_mosaic.version = 11 : i64} {
  func.func @fcblock_kernel(%arg0: i32, %arg1: memref<8x128xf32, #tpu.memory_space<vmem>>, %arg2: memref<8x128xf32, #tpu.memory_space<vmem>>, %arg3: memref<8x128xf32, #tpu.memory_space<vmem>>, %arg4: memref<128x128xbf16, #tpu.memory_space<vmem>>, %arg5: memref<1x128xf32, #tpu.memory_space<vmem>>, %arg6: memref<128x128xbf16, #tpu.memory_space<vmem>>, %arg7: memref<1x128xf32, #tpu.memory_space<vmem>>, %arg8: memref<128x128xbf16, #tpu.memory_space<vmem>>, %arg9: memref<1x128xf32, #tpu.memory_space<vmem>>, %arg10: memref<8x128xf32, #tpu.memory_space<vmem>>) attributes {dimension_semantics = [#tpu.dimension_semantics<arbitrary>], iteration_bounds = array<i64: 1>, scalar_prefetch = 0 : i64, scratch_operands = 0 : i64, tpu.core_type = #tpu.core_type<tc>, window_params = [{transform_indices = @transform_0, window_bounds = array<i64: 8, 128>}, {transform_indices = @transform_1, window_bounds = array<i64: 8, 128>}, {transform_indices = @transform_2, window_bounds = array<i64: 8, 128>}, {pipeline_mode = #tpu.pipeline_mode<synchronous>, transform_indices = @transform_3, window_bounds = array<i64: 128, 128>}, {pipeline_mode = #tpu.pipeline_mode<synchronous>, transform_indices = @transform_4, window_bounds = array<i64: 1, 128>}, {pipeline_mode = #tpu.pipeline_mode<synchronous>, transform_indices = @transform_5, window_bounds = array<i64: 128, 128>}, {pipeline_mode = #tpu.pipeline_mode<synchronous>, transform_indices = @transform_6, window_bounds = array<i64: 1, 128>}, {pipeline_mode = #tpu.pipeline_mode<synchronous>, transform_indices = @transform_7, window_bounds = array<i64: 128, 128>}, {pipeline_mode = #tpu.pipeline_mode<synchronous>, transform_indices = @transform_8, window_bounds = array<i64: 1, 128>}, {transform_indices = @transform_9, window_bounds = array<i64: 8, 128>}]} {
    %c0 = arith.constant 0 : index
    %c0_0 = arith.constant 0 : index
    %0 = vector.load %arg1[%c0, %c0_0] : memref<8x128xf32, #tpu.memory_space<vmem>>, vector<8x128xf32>
    %c0_1 = arith.constant 0 : index
    %c0_2 = arith.constant 0 : index
    %1 = vector.load %arg2[%c0_1, %c0_2] : memref<8x128xf32, #tpu.memory_space<vmem>>, vector<8x128xf32>
    %2 = arith.mulf %0, %1 : vector<8x128xf32>
    %3 = arith.truncf %2 : vector<8x128xf32> to vector<8x128xbf16>
    %c0_3 = arith.constant 0 : index
    %c0_4 = arith.constant 0 : index
    %4 = vector.load %arg4[%c0_3, %c0_4] : memref<128x128xbf16, #tpu.memory_space<vmem>>, vector<128x128xbf16>
    %cst = arith.constant dense<0.000000e+00> : vector<8x128xf32>
    %5 = tpu.matmul %3, %4, %cst {dimension_numbers = #tpu.dot_dimension_numbers<[1], [0], [0], [1], [0, 0, 1, 1], [], []>} : vector<8x128xbf16>, vector<128x128xbf16>, vector<8x128xf32> -> vector<8x128xf32>
    %c0_5 = arith.constant 0 : index
    %c0_6 = arith.constant 0 : index
    %6 = vector.load %arg5[%c0_5, %c0_6] : memref<1x128xf32, #tpu.memory_space<vmem>>, vector<1x128xf32>
    %7 = vector.broadcast %6 : vector<1x128xf32> to vector<8x128xf32>
    %8 = arith.addf %5, %7 : vector<8x128xf32>
    %cst_7 = arith.constant 0.000000e+00 : f32
    %9 = vector.broadcast %cst_7 : f32 to vector<8x128xf32>
    %10 = arith.maximumf %8, %9 : vector<8x128xf32>
    %c0_8 = arith.constant 0 : index
    %c0_9 = arith.constant 0 : index
    %11 = vector.load %arg3[%c0_8, %c0_9] : memref<8x128xf32, #tpu.memory_space<vmem>>, vector<8x128xf32>
    %12 = arith.mulf %10, %11 : vector<8x128xf32>
    %13 = arith.truncf %12 : vector<8x128xf32> to vector<8x128xbf16>
    %c0_10 = arith.constant 0 : index
    %c0_11 = arith.constant 0 : index
    %14 = vector.load %arg6[%c0_10, %c0_11] : memref<128x128xbf16, #tpu.memory_space<vmem>>, vector<128x128xbf16>
    %cst_12 = arith.constant dense<0.000000e+00> : vector<8x128xf32>
    %15 = tpu.matmul %13, %14, %cst_12 {dimension_numbers = #tpu.dot_dimension_numbers<[1], [0], [0], [1], [0, 0, 1, 1], [], []>} : vector<8x128xbf16>, vector<128x128xbf16>, vector<8x128xf32> -> vector<8x128xf32>
    %c0_13 = arith.constant 0 : index
    %c0_14 = arith.constant 0 : index
    %16 = vector.load %arg7[%c0_13, %c0_14] : memref<1x128xf32, #tpu.memory_space<vmem>>, vector<1x128xf32>
    %17 = vector.broadcast %16 : vector<1x128xf32> to vector<8x128xf32>
    %18 = arith.addf %15, %17 : vector<8x128xf32>
    %cst_15 = arith.constant 0.000000e+00 : f32
    %19 = vector.broadcast %cst_15 : f32 to vector<8x128xf32>
    %20 = arith.maximumf %18, %19 : vector<8x128xf32>
    %21 = arith.truncf %20 : vector<8x128xf32> to vector<8x128xbf16>
    %c0_16 = arith.constant 0 : index
    %c0_17 = arith.constant 0 : index
    %22 = vector.load %arg8[%c0_16, %c0_17] : memref<128x128xbf16, #tpu.memory_space<vmem>>, vector<128x128xbf16>
    %cst_18 = arith.constant dense<0.000000e+00> : vector<8x128xf32>
    %23 = tpu.matmul %21, %22, %cst_18 {dimension_numbers = #tpu.dot_dimension_numbers<[1], [0], [0], [1], [0, 0, 1, 1], [], []>} : vector<8x128xbf16>, vector<128x128xbf16>, vector<8x128xf32> -> vector<8x128xf32>
    %c0_19 = arith.constant 0 : index
    %c0_20 = arith.constant 0 : index
    %24 = vector.load %arg9[%c0_19, %c0_20] : memref<1x128xf32, #tpu.memory_space<vmem>>, vector<1x128xf32>
    %25 = vector.broadcast %24 : vector<1x128xf32> to vector<8x128xf32>
    %26 = arith.addf %23, %25 : vector<8x128xf32>
    %c0_21 = arith.constant 0 : index
    %c0_22 = arith.constant 0 : index
    %27 = vector.load %arg10[%c0_21, %c0_22] : memref<8x128xf32, #tpu.memory_space<vmem>>, vector<8x128xf32>
    tpu.vector_store %arg10[%c0_21, %c0_22], %26 {strides = array<i32>} : memref<8x128xf32, #tpu.memory_space<vmem>>, vector<8x128xf32>,
    return
  }
  func.func @transform_0(%arg0: i32) -> (i32, i32) {
    %c0_i32 = arith.constant 0 : i32
    %c0_i32_0 = arith.constant 0 : i32
    return %arg0, %c0_i32 : i32, i32
  }
  func.func @transform_1(%arg0: i32) -> (i32, i32) {
    %c0_i32 = arith.constant 0 : i32
    %c0_i32_0 = arith.constant 0 : i32
    return %arg0, %c0_i32 : i32, i32
  }
  func.func @transform_2(%arg0: i32) -> (i32, i32) {
    %c0_i32 = arith.constant 0 : i32
    %c0_i32_0 = arith.constant 0 : i32
    return %arg0, %c0_i32 : i32, i32
  }
  func.func @transform_3(%arg0: i32) -> (i32, i32) {
    %c0_i32 = arith.constant 0 : i32
    %c0_i32_0 = arith.constant 0 : i32
    %c0_i32_1 = arith.constant 0 : i32
    return %c0_i32, %c0_i32_0 : i32, i32
  }
  func.func @transform_4(%arg0: i32) -> (i32, i32) {
    %c0_i32 = arith.constant 0 : i32
    %c0_i32_0 = arith.constant 0 : i32
    %c0_i32_1 = arith.constant 0 : i32
    return %c0_i32, %c0_i32_0 : i32, i32
  }
  func.func @transform_5(%arg0: i32) -> (i32, i32) {
    %c0_i32 = arith.constant 0 : i32
    %c0_i32_0 = arith.constant 0 : i32
    %c0_i32_1 = arith.constant 0 : i32
    return %c0_i32, %c0_i32_0 : i32, i32
  }
  func.func @transform_6(%arg0: i32) -> (i32, i32) {
    %c0_i32 = arith.constant 0 : i32
    %c0_i32_0 = arith.constant 0 : i32
    %c0_i32_1 = arith.constant 0 : i32
    return %c0_i32, %c0_i32_0 : i32, i32
  }
  func.func @transform_7(%arg0: i32) -> (i32, i32) {
    %c0_i32 = arith.constant 0 : i32
    %c0_i32_0 = arith.constant 0 : i32
    %c0_i32_1 = arith.constant 0 : i32
    return %c0_i32, %c0_i32_0 : i32, i32
  }
  func.func @transform_8(%arg0: i32) -> (i32, i32) {
    %c0_i32 = arith.constant 0 : i32
    %c0_i32_0 = arith.constant 0 : i32
    %c0_i32_1 = arith.constant 0 : i32
    return %c0_i32, %c0_i32_0 : i32, i32
  }
  func.func @transform_9(%arg0: i32) -> (i32, i32) {
    %c0_i32 = arith.constant 0 : i32
    %c0_i32_0 = arith.constant 0 : i32
    return %arg0, %c0_i32 : i32, i32
  }
}

</mosaic_0001>

<bundles_post_ra>
// kernel: tpu_custom_call.1
= control target key start
LH: loop header
LB: loop body
LE: loop exit
PB: predicated region body
PF: predicated region fallthrough
CT: control target
= control target key end

     0   :  { %14 = vsyncpa [#allocation3], 0  ;;  %s992_s0 = inlined_call_operand.hbm [shape: f32[8,128], index: 0, kind: input, shape index: {}]   ;;  %s993_s1 = inlined_call_operand.hbm [shape: f32[8,128], index: 1, kind: input, shape index: {}]   ;;  %s994_s2 = inlined_call_operand.hbm [shape: f32[8,128], index: 2, kind: input, shape index: {}]   ;;  %s995_s3 = inlined_call_operand.hbm [shape: bf16[128,128], index: 3, kind: input, shape index: {}]   ;;  %s996_s4 = inlined_call_operand.vmem [shape: f32[1,128], index: 4, kind: input, shape index: {}]   ;;  %s997_s5 = inlined_call_operand.hbm [shape: bf16[128,128], index: 5, kind: input, shape index: {}]   ;;  %s998_s6 = inlined_call_operand.vmem [shape: f32[1,128], index: 6, kind: input, shape index: {}]   ;;  %s999_s7 = inlined_call_operand.hbm [shape: bf16[128,128], index: 7, kind: input, shape index: {}]   ;;  %s1000_s8 = inlined_call_operand.vmem [shape: f32[1,128], index: 8, kind: input, shape index: {}]   ;;  %s1001_s9 = inlined_call_operand.hbm [shape: f32[8,128], index: 9, kind: output, shape index: {}]  }
   0x1   :  { %15 = vsyncpa [#allocation6], 0 }
   0x2   :  { %16 = vsyncpa [#allocation9], 0 }
   0x3   :  { %17 = vsyncpa [#allocation12], 0 }
   0x4   :  { %18 = vsyncpa [#allocation4], 0  ;;  %s785_s30 = smov [#allocation5]   ;;  %s786_s11 = smov [#allocation8]  }
   0x5   :  { %s35_s10 = sshll.u32 %s785_s30, 4  ;;  %s54_s12 = sshll.u32 %s786_s11, 4  ;;  %s36_s10 = int_to_ptr.vmem [resolvable:$true] %s35_s10  ;;  %s846_s12 = int_to_ptr.vmem [resolvable:$true] %s54_s12 }
   0x6   :  { %s621_s15 = scalar_lea.hbm %s993_s1, 128 }
   0x7   :  { %p622_p0 = scmp.ne.s32.totalorder %s993_s1, %s621_s15  ;;  %p625_p1 = scmp.lt.u32.totalorder %s621_s15, %s993_s1 }
   0x9   :  { %p627_p2 = pnand %p625_p1, %p622_p0 }
   0xb   :  { %630 = shalt.err (!%p627_p2)
}
   0xc   :  { %s631_s20 = scalar_lea.vmem %s36_s10, 128  ;;  %p636_p4 = scmp.lt.s32.totalorder %s36_s10, %s36_s10 }
   0xd   :  { %p632_p3 = scmp.ne.s32.totalorder %s36_s10, %s631_s20  ;;  %p637_p5 = scmp.lt.s32.totalorder %s631_s20, %s631_s20 }
   0xf   :  { %p638_p6 = por %p637_p5, %p636_p4 }
  0x11   :  { %p639_p7 = pnand %p638_p6, %p632_p3 }
  0x13   :  { %642 = shalt.err (!%p639_p7)
}
  0x14   :  { %38 = dma.hbm_to_vmem [thread:$0]  %s993_s1, 128, %s36_s10, [#allocation6]  }
  0x15   :  { %s643_s25 = scalar_lea.hbm %s995_s3, 1024 }
  0x16   :  { %p644_p8 = scmp.ne.s32.totalorder %s995_s3, %s643_s25  ;;  %p647_p9 = scmp.lt.u32.totalorder %s643_s25, %s995_s3 }
  0x18   :  { %p649_p10 = pnand %p647_p9, %p644_p8 }
  0x1a   :  { %652 = shalt.err (!%p649_p10)
}
  0x1b   :  { %s653_s30 = scalar_lea.vmem %s846_s12, 1024  ;;  %p658_p12 = scmp.lt.s32.totalorder %s846_s12, %s846_s12 }
  0x1c   :  { %p654_p11 = scmp.ne.s32.totalorder %s846_s12, %s653_s30  ;;  %p659_p13 = scmp.lt.s32.totalorder %s653_s30, %s653_s30 }
  0x1e   :  { %p660_p0 = por %p659_p13, %p658_p12 }
  0x20   :  { %p661_p1 = pnand %p660_p0, %p654_p11 }
  0x22   :  { %664 = shalt.err (!%p661_p1)
}
  0x23   :  { %s787_s1 = smov 64   ;;  %s788_s10 = smov 4  }
  0x24   :  { %60 = dma.hbm_to_vmem [thread:$0]  %s995_s3, 1024, %s846_s12, [#allocation9], %s787_s1, %s787_s1, %s788_s10  }
  0x25   :  { %s789_s14 = smov [#allocation2]   ;;  %s790_s16 = smov [#allocation7]  }
  0x26   :  { %s25_s15 = sshll.u32 %s789_s14, 4  ;;  %s45_s17 = sshll.u32 %s790_s16, 4  ;;  %s26_s15 = int_to_ptr.vmem [resolvable:$true] %s25_s15  ;;  %s46_s17 = int_to_ptr.vmem [resolvable:$true] %s45_s17 }
  0x27   :  { %s665_s20 = scalar_lea.hbm %s992_s0, 128 }
  0x28   :  { %p666_p2 = scmp.ne.s32.totalorder %s992_s0, %s665_s20  ;;  %p669_p3 = scmp.lt.u32.totalorder %s665_s20, %s992_s0 }
  0x2a   :  { %p671_p4 = pnand %p669_p3, %p666_p2 }
  0x2c   :  { %674 = shalt.err (!%p671_p4)
}
  0x2d   :  { %s675_s3 = scalar_lea.vmem %s26_s15, 128  ;;  %p680_p6 = scmp.lt.s32.totalorder %s26_s15, %s26_s15 }
  0x2e   :  { %p676_p5 = scmp.ne.s32.totalorder %s26_s15, %s675_s3  ;;  %p681_p7 = scmp.lt.s32.totalorder %s675_s3, %s675_s3 }
  0x30   :  { %p682_p8 = por %p681_p7, %p680_p6 }
  0x32   :  { %p683_p9 = pnand %p682_p8, %p676_p5 }
  0x34   :  { %686 = shalt.err (!%p683_p9)
}
  0x35   :  { %28 = dma.hbm_to_vmem [thread:$0]  %s992_s0, 128, %s26_s15, [#allocation3]  }
  0x36   :  { %s687_s28 = scalar_lea.hbm %s994_s2, 128 }
  0x37   :  { %p688_p10 = scmp.ne.s32.totalorder %s994_s2, %s687_s28  ;;  %p691_p11 = scmp.lt.u32.totalorder %s687_s28, %s994_s2 }
  0x39   :  { %p693_p12 = pnand %p691_p11, %p688_p10 }
  0x3b   :  { %696 = shalt.err (!%p693_p12)
}
  0x3c   :  { %s697_s14 = scalar_lea.vmem %s46_s17, 128  ;;  %p702_p0 = scmp.lt.s32.totalorder %s46_s17, %s46_s17 }
  0x3d   :  { %p698_p13 = scmp.ne.s32.totalorder %s46_s17, %s697_s14  ;;  %p703_p1 = scmp.lt.s32.totalorder %s697_s14, %s697_s14 }
  0x3f   :  { %p704_p2 = por %p703_p1, %p702_p0 }
  0x41   :  { %p705_p3 = pnand %p704_p2, %p698_p13 }
  0x43   :  { %708 = shalt.err (!%p705_p3)
}
  0x44   :  { %48 = dma.hbm_to_vmem [thread:$0]  %s994_s2, 128, %s46_s17, [#allocation6]  }
  0x45   :  { %s791_s16 = smov [#allocation10]   ;;  %s792_s19 = smov [#allocation11]  }
  0x46   :  { %s68_s18 = sshll.u32 %s791_s16, 4  ;;  %s82_s20 = sshll.u32 %s792_s19, 4  ;;  %s69_s18 = int_to_ptr.vmem [resolvable:$true] %s68_s18  ;;  %s904_s20 = int_to_ptr.vmem [resolvable:$true] %s82_s20 }
  0x47   :  { %s709_s23 = scalar_lea.hbm %s997_s5, 1024 }
  0x48   :  { %p710_p4 = scmp.ne.s32.totalorder %s997_s5, %s709_s23  ;;  %p713_p5 = scmp.lt.u32.totalorder %s709_s23, %s997_s5 }
  0x4a   :  { %p715_p6 = pnand %p713_p5, %p710_p4 }
  0x4c   :  { %718 = shalt.err (!%p715_p6)
}
  0x4d   :  { %s719_s2 = scalar_lea.vmem %s69_s18, 1024  ;;  %p724_p8 = scmp.lt.s32.totalorder %s69_s18, %s69_s18 }
  0x4e   :  { %p720_p7 = scmp.ne.s32.totalorder %s69_s18, %s719_s2  ;;  %p725_p9 = scmp.lt.s32.totalorder %s719_s2, %s719_s2 }
  0x50   :  { %p726_p10 = por %p725_p9, %p724_p8 }
  0x52   :  { %p727_p11 = pnand %p726_p10, %p720_p7 }
  0x54   :  { %730 = shalt.err (!%p727_p11)
}
  0x55   :  { %74 = dma.hbm_to_vmem [thread:$0]  %s997_s5, 1024, %s69_s18, [#allocation9], %s787_s1, %s787_s1, %s788_s10  }
  0x56   :  { %s731_s29 = scalar_lea.hbm %s999_s7, 1024 }
  0x57   :  { %p732_p12 = scmp.ne.s32.totalorder %s999_s7, %s731_s29  ;;  %p735_p13 = scmp.lt.u32.totalorder %s731_s29, %s999_s7 }
  0x59   :  { %p737_p0 = pnand %p735_p13, %p732_p12 }
  0x5b   :  { %740 = shalt.err (!%p737_p0)
}
  0x5c   :  { %s741_s0 = scalar_lea.vmem %s904_s20, 1024  ;;  %p746_p2 = scmp.lt.s32.totalorder %s904_s20, %s904_s20 }
  0x5d   :  { %p742_p1 = scmp.ne.s32.totalorder %s904_s20, %s741_s0  ;;  %p747_p3 = scmp.lt.s32.totalorder %s741_s0, %s741_s0 }
  0x5f   :  { %p748_p4 = por %p747_p3, %p746_p2 }
  0x61   :  { %p749_p5 = pnand %p748_p4, %p742_p1 }
  0x63   :  { %752 = shalt.err (!%p749_p5)
}
  0x64   :  { %88 = dma.hbm_to_vmem [thread:$0]  %s999_s7, 1024, %s904_s20, [#allocation12], %s787_s1, %s787_s1, %s788_s10  }
  0x65   :  { %775 = dma.done.wait [#allocation3], 128  }
  0x66   :  { %776 = vsyncadd [#allocation3], 4294967168 }
  0x67   :  { %777 = dma.done.wait [#allocation6], 256  }
  0x68   :  { %778 = vsyncadd [#allocation6], 4294967040 }
  0x69   :  { %779 = dma.done.wait [#allocation9], 2048  }
  0x6a   :  { %780 = vsyncadd [#allocation9], 4294965248 }
  0x6b   :  { %781 = dma.done.wait [#allocation12], 1024  }
  0x6c   :  { %782 = vsyncadd [#allocation12], 4294966272  ;;  %v793_v0 = vmov 0.0   ;;  %vm794_vm0 = vmmov 0   ;;  %v597_v1 = vld [vmem:[#allocation8] sm:$0xff]   ;;  %v598_v2 = vld [vmem:[#allocation8 + $0x8] sm:$0xff]  }
  0x6d   :  { %526 = vmatprep.subr.bf16.mxu0 %v793_v0  ;;  %542 = vmatprep.mubr.msk.bf16.mxu0 %vm794_vm0, %v793_v0  ;;  %v599_v3 = vld [vmem:[#allocation8 + $0x10] sm:$0xff]   ;;  %v605_v4 = vld [vmem:[#allocation10] sm:$0xff]   ;;  %v600_v5 = vld [vmem:[#allocation8 + $0x18] sm:$0xff]   ;;  %s795_s19 = smov [#allocation13]  }
  0x6e   :  { %546 = vmatprep.subr.bf16.mxu1 %v793_v0  ;;  %562 = vmatprep.mubr.msk.bf16.mxu1 %vm794_vm0, %v793_v0  ;;  %v606_v6 = vld [vmem:[#allocation10 + $0x8] sm:$0xff]   ;;  %v601_v7 = vld [vmem:[#allocation8 + $0x20] sm:$0xff]   ;;  %v607_v8 = vld [vmem:[#allocation10 + $0x10] sm:$0xff]   ;;  %s460_s20 = sshll.u32 %s795_s19, 4  ;;  %s461_s20 = int_to_ptr.vmem [resolvable:$true] %s460_s20 }
  0x6f   :  { %527 = vmatpush3.bf16.msra.mxu0 %v597_v1  ;;  %547 = vmatpush3.bf16.msra.mxu1 %v605_v4  ;;  %v602_v9 = vld [vmem:[#allocation8 + $0x28] sm:$0xff]   ;;  %v608_v10 = vld [vmem:[#allocation10 + $0x18] sm:$0xff]   ;;  %v603_v11 = vld [vmem:[#allocation8 + $0x30] sm:$0xff]   ;;  %p758_p7 = scmp.lt.s32.totalorder %s461_s20, %s461_s20 }
  0x70   :  { %528 = vmatprep.subr.bf16.mxu0 %v793_v0  ;;  %548 = vmatprep.subr.bf16.mxu1 %v793_v0  ;;  %v110_v12 = vld [vmem:[#allocation2] sm:$0xff]  ;;  %v111_v13 = vld [vmem:[#allocation5] sm:$0xff]  ;;  %v609_v14 = vld [vmem:[#allocation10 + $0x20] sm:$0xff]  }
  0x71   :  { %v112_v15 = vmul.f32 %v111_v13, %v110_v12  ;;  %v604_v16 = vld [vmem:[#allocation8 + $0x38] sm:$0xff]   ;;  %v610_v17 = vld [vmem:[#allocation10 + $0x28] sm:$0xff]   ;;  %v611_v19 = vld [vmem:[#allocation10 + $0x30] sm:$0xff]  }
  0x72   :  { %v612_v20 = vld [vmem:[#allocation10 + $0x38] sm:$0xff]   ;;  %v613_v21 = vld [vmem:[#allocation11] sm:$0xff]   ;;  %v614_v22 = vld [vmem:[#allocation11 + $0x8] sm:$0xff]  }
  0x73   :  { %529 = vmatpush3.bf16.msra.mxu0 %v598_v2  ;;  %549 = vmatpush3.bf16.msra.mxu1 %v606_v6  ;;  %v113_v18 = vpack.c.bf16 %v112_v15, %v112_v15  ;;  %v615_v23 = vld [vmem:[#allocation11 + $0x10] sm:$0xff]   ;;  %v616_v24 = vld [vmem:[#allocation11 + $0x18] sm:$0xff]   ;;  %v617_v25 = vld [vmem:[#allocation11 + $0x20] sm:$0xff]  }
  0x74   :  { %530 = vmatprep.subr.bf16.mxu0 %v793_v0  ;;  %550 = vmatprep.subr.bf16.mxu1 %v793_v0  ;;  %v618_v26 = vld [vmem:[#allocation11 + $0x28] sm:$0xff]   ;;  %v226_v31 = vld [vmem:[#allocation7] sm:$0xff]  ;;  %v619_v37 = vld [vmem:[#allocation11 + $0x30] sm:$0xff]  }
  0x75   :  { %v472_v27 = vld [vmem:[%s996_s4] ss:$0 sm:$0xff]  ;;  %v620_v38 = vld [vmem:[#allocation11 + $0x38] sm:$0xff]  }
  0x76   :  { %v481_v39 = vld [vmem:[%s998_s6] ss:$0 sm:$0xff]  ;;  %s753_s6 = scalar_lea.vmem %s461_s20, 128 }
  0x77   :  { %531 = vmatpush3.bf16.msra.mxu0 %v599_v3  ;;  %551 = vmatpush3.bf16.msra.mxu1 %v607_v8  ;;  %v490_v47 = vld [vmem:[%s1000_s8] ss:$0 sm:$0xff]  ;;  %p754_p6 = scmp.ne.s32.totalorder %s461_s20, %s753_s6  ;;  %p759_p8 = scmp.lt.s32.totalorder %s753_s6, %s753_s6 }
  0x78   :  { %532 = vmatprep.subr.bf16.mxu0 %v793_v0  ;;  %552 = vmatprep.subr.bf16.mxu1 %v793_v0 }
  0x79   :  { %p760_p9 = por %p759_p8, %p758_p7 }
  0x7b   :  { %533 = vmatpush3.bf16.msra.mxu0 %v600_v5  ;;  %553 = vmatpush3.bf16.msra.mxu1 %v608_v10  ;;  %p761_p10 = pnand %p760_p9, %p754_p6 }
  0x7c   :  { %534 = vmatprep.subr.bf16.mxu0 %v793_v0  ;;  %554 = vmatprep.subr.bf16.mxu1 %v793_v0 }
  0x7f   :  { %535 = vmatpush3.bf16.msra.mxu0 %v601_v7  ;;  %555 = vmatpush3.bf16.msra.mxu1 %v609_v14 }
  0x80   :  { %536 = vmatprep.subr.bf16.mxu0 %v793_v0  ;;  %556 = vmatprep.subr.bf16.mxu1 %v793_v0 }
  0x83   :  { %537 = vmatpush3.bf16.msra.mxu0 %v602_v9  ;;  %557 = vmatpush3.bf16.msra.mxu1 %v610_v17 }
  0x84   :  { %538 = vmatprep.subr.bf16.mxu0 %v793_v0  ;;  %558 = vmatprep.subr.bf16.mxu1 %v793_v0 }
  0x87   :  { %539 = vmatpush3.bf16.msra.mxu0 %v603_v11  ;;  %559 = vmatpush3.bf16.msra.mxu1 %v611_v19 }
  0x88   :  { %540 = vmatprep.subr.bf16.mxu0 %v793_v0  ;;  %560 = vmatprep.subr.bf16.mxu1 %v793_v0 }
  0x8b   :  { %541 = vmatpush3.bf16.msra.mxu0 %v604_v16  ;;  %561 = vmatpush3.bf16.msra.mxu1 %v612_v20 }
  0x8c   :  { %566 = vmatprep.subr.bf16.mxu0 %v793_v0 }
  0x8e   :  { %543 = vmatmul.mubr.bf16.vlgmr.msra.gmra.mrb[0].mxu0 %v113_v18 }
  0x8f   :  { %582 = vmatprep.mubr.msk.bf16.mxu0 %vm794_vm0, %v793_v0  ;;  %567 = vmatpush3.bf16.msra.mxu0 %v613_v21 }
  0x90   :  { %568 = vmatprep.subr.bf16.mxu0 %v793_v0 }
  0x93   :  { %569 = vmatpush3.bf16.msra.mxu0 %v614_v22 }
  0x94   :  { %570 = vmatprep.subr.bf16.mxu0 %v793_v0 }
  0x97   :  { %571 = vmatpush3.bf16.msra.mxu0 %v615_v23 }
  0x98   :  { %572 = vmatprep.subr.bf16.mxu0 %v793_v0 }
  0x9b   :  { %573 = vmatpush3.bf16.msra.mxu0 %v616_v24 }
  0x9c   :  { %574 = vmatprep.subr.bf16.mxu0 %v793_v0 }
  0x9f   :  { %575 = vmatpush3.bf16.msra.mxu0 %v617_v25 }
  0xa0   :  { %576 = vmatprep.subr.bf16.mxu0 %v793_v0 }
  0xa3   :  { %577 = vmatpush3.bf16.msra.mxu0 %v618_v26 }
  0xa4   :  { %578 = vmatprep.subr.bf16.mxu0 %v793_v0 }
  0xa7   :  { %579 = vmatpush3.bf16.msra.mxu0 %v619_v37 }
  0xa8   :  { %580 = vmatprep.subr.bf16.mxu0 %v793_v0 }
  0xab   :  { %581 = vmatpush3.bf16.msra.mxu0 %v620_v38 }
 0x161   :  { %v219_v28 = vpop.f32.mrb[0].mxu0 }
 0x162   :  { %v220_v29 = vadd.f32 %v472_v27, %v219_v28  ;;  %v544_v30 = vpop.f32.mrb[1].mxu0 }
 0x163   :  { %v222_v32 = vpop.f32.mrb[2].mxu0 }
 0x164   :  { %v225_v33 = vmax.f32 %v220_v29, 0.0  ;;  %v545_v34 = vpop.f32.mrb[3].mxu0 }
 0x166   :  { %v227_v35 = vmul.f32 %v226_v31, %v225_v33 }
 0x168   :  { %v228_v36 = vpack.c.bf16 %v227_v35, %v227_v35 }
 0x16a   :  { %563 = vmatmul.mubr.bf16.vlgmr.msra.gmra.mrb[0].mxu1 %v228_v36 }
 0x23d   :  { %v334_v40 = vpop.f32.mrb[0].mxu1 }
 0x23e   :  { %v335_v41 = vadd.f32 %v481_v39, %v334_v40  ;;  %v564_v42 = vpop.f32.mrb[1].mxu1 }
 0x23f   :  { %v337_v43 = vpop.f32.mrb[2].mxu1 }
 0x240   :  { %v340_v44 = vmax.f32 %v335_v41, 0.0  ;;  %v565_v45 = vpop.f32.mrb[3].mxu1 }
 0x242   :  { %v341_v46 = vpack.c.bf16 %v340_v44, %v340_v44 }
 0x244   :  { %583 = vmatmul.mubr.bf16.vlgmr.msra.gmra.mrb[4].mxu0 %v341_v46 }
 0x317   :  { %v447_v48 = vpop.f32.mrb[4].mxu0 }
 0x318   :  { %v448_v49 = vadd.f32 %v490_v47, %v447_v48  ;;  %v584_v50 = vpop.f32.mrb[5].mxu0 }
 0x319   :  { %v450_v51 = vpop.f32.mrb[6].mxu0 }
 0x31a   :  { %453 = vst [vmem:[#allocation13] sm:$0xff] %v448_v49  ;;  %v585_v52 = vpop.f32.mrb[7].mxu0 }
 0x31b   :  { %764 = shalt.err (!%p761_p10)
}
 0x31c   :  { %s765_s8 = scalar_lea.hbm %s1001_s9, 128 }
 0x31d   :  { %p766_p11 = scmp.ne.s32.totalorder %s1001_s9, %s765_s8  ;;  %p769_p12 = scmp.lt.u32.totalorder %s765_s8, %s1001_s9 }
 0x31f   :  { %p771_p13 = pnand %p769_p12, %p766_p11 }
 0x321   :  { %774 = shalt.err (!%p771_p13)
}
 0x322   :  { %463 = dma.vmem_to_hbm [thread:$0]  %s461_s20, 128, %s1001_s9, [#allocation4]  }
 0x323   :  { %783 = dma.done.wait [#allocation4], 128  }
 0x324   :  { %784 = vsyncadd [#allocation4], 4294967168 }
 0x325   :  { %467 = vsyncpa [#allocation3], 1 }
 0x326   :  { %468 = vsyncpa [#allocation6], 1 }
 0x327   :  { %469 = vsyncpa [#allocation9], 1 }
 0x328   :  { %470 = vsyncpa [#allocation12], 1 }
 0x329   :  { %471 = vsyncpa [#allocation4], 1 }

</bundles_post_ra>
